<compile_context>
chip_gen: v6e
topology: v6e:2x2x1
jax: 0.10.0
libtpu: 0.0.40
codegen_flags: <defaults>
</compile_context>

<pallas_src>
import jax
import jax.numpy as jnp
from jax.experimental import pallas as pl
from jax.experimental.pallas import tpu as pltpu


def logreg_kernel(x_ref, w_ref, b_ref, o_ref):
    # Cast per-tile (inputs may be bf16/f16; stream native width from HBM).
    x = x_ref[...].astype(jnp.float32)      # [TILE_B, D] (VMEM)
    w = w_ref[...]                          # [1, D] f32  (VMEM, resident)
    b = b_ref[0]                            # scalar f32  (SMEM, scalar path)
    # VPU broadcast-mul + XLU lane reduction (avoids a 1-column MXU matmul).
    z = jnp.sum(x * w, axis=-1, keepdims=True) + b          # [TILE_B, 1] f32
    # Exact sigmoid: exp on the EUP, exact divide — free under the HBM stream.
    o_ref[...] = 1.0 / (1.0 + jnp.exp(-z))


def _round_down8(n):
    return max(8, (n // 8) * 8)


def logistic_regression_forward(x, w, b, *, tile_b=None,
                                vmem_budget_bytes=24 * 1024 * 1024,
                                min_grid_steps=4):
    """x: [B, D] (f32/bf16/f16), w: [D, 1], b: [1,1] or scalar -> [B, 1] f32."""
    B, D = x.shape
    x_bytes = jnp.dtype(x.dtype).itemsize
    w_row = jnp.reshape(w, (1, D)).astype(jnp.float32)       # lane-major weight row
    b_s = jnp.reshape(b, (1,)).astype(jnp.float32)           # scalar bias for SMEM

    if tile_b is None:
        # Budget covers BOTH double-buffered streams: the X block at native
        # dtype plus the output block, which is lane-padded to 128 f32 lanes
        # per row, plus the (sublane-padded) resident W row.
        per_buf = max(vmem_budget_bytes // 2, 4096)
        row_bytes = D * x_bytes + 128 * 4
        w_buf = 8 * D * 4
        tile_b = max(8, (per_buf - w_buf) // row_bytes)
        # Keep >= min_grid_steps grid steps for moderate batches so v7x can
        # shard the "parallel" axis across its 2 TCs and pipelining survives.
        if B >= min_grid_steps * 8:
            tile_b = min(tile_b, _round_down8(pl.cdiv(B, min_grid_steps)))
    tile_b = min(tile_b, B)
    if tile_b < B:
        tile_b = _round_down8(tile_b)                        # sublane-aligned tile
    grid = (pl.cdiv(B, tile_b),)

    # Scoped-VMEM limit consistent with the chosen tiles (+25% headroom);
    # safe on all generations (v5e/v6e 128 MiB physical, v7x 64 MiB).
    est_vmem = 2 * (tile_b * D * x_bytes + tile_b * 128 * 4 + 8 * D * 4)
    vmem_limit = max(32 * 1024 * 1024, int(est_vmem * 1.25))

    return pl.pallas_call(
        logreg_kernel,
        out_shape=jax.ShapeDtypeStruct((B, 1), jnp.float32),
        grid=grid,
        in_specs=[
            pl.BlockSpec((tile_b, D), lambda i: (i, 0)),                   # X tile
            pl.BlockSpec((1, D), lambda i: (0, 0)),                        # W row (resident)
            pl.BlockSpec(memory_space=pltpu.MemorySpace.SMEM),             # bias scalar
        ],
        out_specs=pl.BlockSpec((tile_b, 1), lambda i: (i, 0)),
        compiler_params=pltpu.CompilerParams(
            dimension_semantics=("parallel",),               # shard tiles across TCs (v7x)
            vmem_limit_bytes=vmem_limit),
    )(x, w_row, b_s)


if __name__ == "__main__":
    key = jax.random.PRNGKey(0)
    k_x, k_w, k_b, k_x2 = jax.random.split(key, 4)

    # --- Small shapes matching the module (Linear(input_size) -> sigmoid) ---
    batch = 8
    input_size = 32
    x = jax.random.normal(k_x, (batch, input_size), dtype=jnp.float32)
    w = jax.random.normal(k_w, (input_size, 1), dtype=jnp.float32) * 0.1
    b = jax.random.normal(k_b, (1, 1), dtype=jnp.float32) * 0.1

    y_hat = logistic_regression_forward(x, w, b)
    y_hat = jax.block_until_ready(y_hat)

    ref = jax.nn.sigmoid(x @ w + b)
    assert y_hat.shape == (batch, 1)
    assert jnp.allclose(y_hat, ref, atol=1e-5, rtol=1e-5)
    assert bool(jnp.all((y_hat >= 0) & (y_hat <= 1)))

    # --- Tiled / pipelined path: bf16 input (no wrapper upcast), grid > 1 ---
    b2, d2 = 260, 128
    x2 = jax.random.normal(k_x2, (b2, d2), dtype=jnp.bfloat16)
    w2 = jax.random.normal(k_w, (d2, 1), dtype=jnp.float32) * 0.05
    y2 = jax.block_until_ready(logistic_regression_forward(x2, w2, b))
    ref2 = jax.nn.sigmoid(x2.astype(jnp.float32) @ w2 + b)
    assert y2.shape == (b2, 1)
    assert jnp.allclose(y2, ref2, atol=1e-4, rtol=1e-4)
    assert bool(jnp.all((y2 >= 0) & (y2 <= 1)))

    # --- Explicit tile_b override still works (partial last tile) ---
    y3 = jax.block_until_ready(
        logistic_regression_forward(x2, w2, b, tile_b=96))
    assert jnp.allclose(y3, ref2, atol=1e-4, rtol=1e-4)

    print("KERNEL_OK")
</pallas_src>

<mosaic_0001>
module attributes {stable_mosaic.version = 11 : i64} {
  func.func @logreg_kernel(%arg0: i32, %arg1: memref<8x32xf32, #tpu.memory_space<vmem>>, %arg2: memref<1x32xf32, #tpu.memory_space<vmem>>, %arg3: memref<1xf32, #tpu.memory_space<smem>>, %arg4: memref<8x1xf32, #tpu.memory_space<vmem>>) attributes {dimension_semantics = [#tpu.dimension_semantics<parallel>], iteration_bounds = array<i64: 1>, scalar_prefetch = 0 : i64, scratch_operands = 0 : i64, tpu.core_type = #tpu.core_type<tc>, window_params = [{transform_indices = @transform_0, window_bounds = array<i64: 8, 32>}, {pipeline_mode = #tpu.pipeline_mode<synchronous>, transform_indices = @transform_1, window_bounds = array<i64: 1, 32>}, {transform_indices = @transform_2, window_bounds = array<i64: 1>}, {transform_indices = @transform_3, window_bounds = array<i64: 8, 1>}]} {
    %c0 = arith.constant 0 : index
    %c0_0 = arith.constant 0 : index
    %0 = vector.load %arg1[%c0, %c0_0] : memref<8x32xf32, #tpu.memory_space<vmem>>, vector<8x32xf32>
    %c0_1 = arith.constant 0 : index
    %c0_2 = arith.constant 0 : index
    %1 = vector.load %arg2[%c0_1, %c0_2] : memref<1x32xf32, #tpu.memory_space<vmem>>, vector<1x32xf32>
    %c0_3 = arith.constant 0 : index
    %2 = memref.load %arg3[%c0_3] : memref<1xf32, #tpu.memory_space<smem>>
    %3 = vector.broadcast %1 : vector<1x32xf32> to vector<8x32xf32>
    %4 = arith.mulf %0, %3 : vector<8x32xf32>
    %cst = arith.constant dense<0.000000e+00> : vector<8xf32>
    %5 = vector.multi_reduction <add>, %4, %cst [1] : vector<8x32xf32> to vector<8xf32>
    %6 = vector.shape_cast %5 : vector<8xf32> to vector<8x1xf32>
    %7 = vector.broadcast %2 : f32 to vector<8x1xf32>
    %8 = arith.addf %6, %7 : vector<8x1xf32>
    %cst_4 = arith.constant 0.000000e+00 : f32
    %9 = vector.broadcast %cst_4 : f32 to vector<8x1xf32>
    %10 = arith.subf %9, %8 : vector<8x1xf32>
    %11 = math.exp %10 : vector<8x1xf32>
    %cst_5 = arith.constant 1.000000e+00 : f32
    %12 = vector.broadcast %cst_5 : f32 to vector<8x1xf32>
    %13 = arith.addf %12, %11 : vector<8x1xf32>
    %cst_6 = arith.constant 1.000000e+00 : f32
    %14 = vector.broadcast %cst_6 : f32 to vector<8x1xf32>
    %15 = arith.divf %14, %13 : vector<8x1xf32>
    %c0_7 = arith.constant 0 : index
    %c0_8 = arith.constant 0 : index
    %16 = vector.load %arg4[%c0_7, %c0_8] : memref<8x1xf32, #tpu.memory_space<vmem>>, vector<8x1xf32>
    tpu.vector_store %arg4[%c0_7, %c0_8], %15 {strides = array<i32>} : memref<8x1xf32, #tpu.memory_space<vmem>>, vector<8x1xf32>,
    return
  }
  func.func @transform_0(%arg0: i32) -> (i32, i32) {
    %c0_i32 = arith.constant 0 : i32
    %c0_i32_0 = arith.constant 0 : i32
    return %arg0, %c0_i32 : i32, i32
  }
  func.func @transform_1(%arg0: i32) -> (i32, i32) {
    %c0_i32 = arith.constant 0 : i32
    %c0_i32_0 = arith.constant 0 : i32
    %c0_i32_1 = arith.constant 0 : i32
    return %c0_i32, %c0_i32_0 : i32, i32
  }
  func.func @transform_2(%arg0: i32) -> i32 {
    %c0_i32 = arith.constant 0 : i32
    %c0_i32_0 = arith.constant 0 : i32
    return %c0_i32 : i32
  }
  func.func @transform_3(%arg0: i32) -> (i32, i32) {
    %c0_i32 = arith.constant 0 : i32
    %c0_i32_0 = arith.constant 0 : i32
    return %arg0, %c0_i32 : i32, i32
  }
}

</mosaic_0001>

<bundles_post_ra>
// kernel: tpu_custom_call.1
= control target key start
LH: loop header
LB: loop body
LE: loop exit
PB: predicated region body
PF: predicated region fallthrough
CT: control target
= control target key end

     0   :  { %9 = vsyncpa [#allocation4], 0  ;;  %s84_s12 = smov [#allocation3]   ;;  %s117_s0 = inlined_call_operand.hbm [shape: f32[8,32], index: 0, kind: input, shape index: {}]   ;;  %s118_s1 = inlined_call_operand.vmem [shape: f32[1,32], index: 1, kind: input, shape index: {}]   ;;  %s119_s2 = inlined_call_operand.<no memory space> [shape: f32[1], index: 2, kind: input, shape index: {}]   ;;  %s120_s3 = inlined_call_operand.vmem [shape: f32[8,1], index: 3, kind: output, shape index: {}]  }
   0x1   :  { %s16_s13 = sshll.u32 %s84_s12, 4  ;;  %s17_s13 = int_to_ptr.vmem [resolvable:$true] %s16_s13 }
   0x2   :  { %s70_s14 = scalar_lea.vmem %s17_s13, 128  ;;  %p75_p1 = scmp.lt.s32.totalorder %s17_s13, %s17_s13 }
   0x3   :  { %p71_p0 = scmp.ne.s32.totalorder %s17_s13, %s70_s14  ;;  %p76_p2 = scmp.lt.s32.totalorder %s70_s14, %s70_s14 }
   0x5   :  { %p77_p3 = por %p76_p2, %p75_p1 }
   0x7   :  { %p78_p4 = pnand %p77_p3, %p71_p0 }
   0x9   :  { %81 = shalt.err (!%p78_p4)
}
   0xa   :  { %19 = dma.hbm_to_vmem [thread:$0]  %s117_s0, 128, %s17_s13, [#allocation4]  }
   0xb   :  { %82 = dma.done.wait [#allocation4], 128  }
   0xc   :  { %83 = vsyncadd [#allocation4], 4294967168  ;;  %v27_v0 = vld [vmem:[#allocation3] sm:$0xff]  ;;  %vm37_vm0 = vcmask 261120   ;;  %v41_v4 = vstv %s119_s2  ;;  %vm49_vm1 = vcmask 7168  }
   0xd   :  { %v56_v1 = vld [vmem:[%s118_s1] ss:$0 sm:$0xff] }
   0xe   :  { %v36_v2 = vmul.f32 %v56_v1, %v27_v0 }
  0x10   :  { %v38_v3 = vsel %vm37_vm0, %v36_v2, 0.0 }
  0x11   :  { %39 = vadd.xlane.f32.xlu0 %v38_v3 }
  0x9a   :  { %v40_v5 = vpop.xlane.xlu0 %39 }
  0x9b   :  { %v42_v6 = vadd.f32 %v41_v4, %v40_v5 }
  0x9d   :  { %v43_v7 = vsub.f32 0.0, %v42_v6 }
  0x9f   :  { %v44_v8 = vmul.f32 1.442695, %v43_v7 }
  0xa1   :  { %58 = vpow2.f32 %v44_v8 }
  0xae   :  { %v59_v9 = vpop.eup %58 }
  0xaf   :  { %v46_v10 = vadd.f32 1.0, %v59_v9 }
  0xb1   :  { %60 = vrcp.f32 %v46_v10 }
  0xbe   :  { %v61_v11 = vpop.eup %60 }
  0xbf   :  { %50 = vst.msk [vmem:[%s120_s3] sm:$0xff] %vm49_vm1, %v61_v11 }
  0xc0   :  { %55 = vsyncpa [#allocation4], 1 }

</bundles_post_ra>
